<compile_context>
chip_gen: v7x
topology: tpu7x:2x2x1
jax: 0.10.0
libtpu: 0.0.40
codegen_flags: <defaults>
</compile_context>

<pallas_src>
import jax
import jax.numpy as jnp
from jax.experimental import pallas as pl
from jax.experimental.pallas import tpu as pltpu


def _embedding_onehot_kernel(ids_ref, table_ref, out_ref):
    # ids_ref   : VMEM (tm, 1)        int32 — indices for this output tile
    # table_ref : VMEM (obj_size, D)  f32   — full table, resident across steps
    # out_ref   : VMEM (tm, D)        f32
    tm = out_ref.shape[0]
    obj_size = table_ref.shape[0]

    ids = ids_ref[...]                                              # (tm, 1)
    # torch.nn.Embedding raises on out-of-range ids; we clamp (documented diff).
    ids = jnp.clip(ids, 0, obj_size - 1)

    cols = jax.lax.broadcasted_iota(jnp.int32, (tm, obj_size), 1)   # (tm, obj_size)
    onehot = (cols == ids).astype(table_ref.dtype)                  # exact 0/1

    # Gather == one-hot @ table on the MXU; HIGHEST precision keeps f32 exact.
    out_ref[...] = jnp.dot(
        onehot,
        table_ref[...],
        preferred_element_type=jnp.float32,
        precision=jax.lax.Precision.HIGHEST,
    ).astype(out_ref.dtype)


def embedding_lookup(obj_id, table, *, max_rows_per_step=512):
    """Pallas embedding gather. obj_id: int array, table: (obj_size, embd_dim)."""
    obj_size, embd_dim = table.shape
    orig_shape = obj_id.shape

    ids = obj_id.reshape(-1).astype(jnp.int32)
    n = ids.shape[0]

    # Row tile: whole problem in one block when small, else big fixed tiles.
    n8 = ((n + 7) // 8) * 8                      # sublane-align
    tm = n8 if n8 <= 1024 else max_rows_per_step
    n_pad = pl.cdiv(n, tm) * tm
    if n_pad != n:
        # TODO(synk): mask the final partial tile's store in-kernel to avoid
        # the post-kernel slice copy; only hit when batch*seq doesn't tile.
        ids = jnp.pad(ids, (0, n_pad - n))

    ids2d = ids.reshape(n_pad, 1)
    grid = (n_pad // tm,)

    # VMEM budget: resident table + ids/out tiles (double-buffered) + one-hot
    # intermediate + headroom.  Cap at 64 MiB so the request is valid on v7x.
    need = (2 * int(table.nbytes)
            + 2 * tm * (embd_dim + 1) * 4
            + tm * obj_size * 4
            + (2 << 20))
    vmem_limit = int(min(max(need, 32 << 20), 64 << 20))

    out = pl.pallas_call(
        _embedding_onehot_kernel,
        out_shape=jax.ShapeDtypeStruct((n_pad, embd_dim), table.dtype),
        grid_spec=pltpu.PrefetchScalarGridSpec(
            num_scalar_prefetch=0,
            grid=grid,
            in_specs=[
                # Per-tile indices (lane-narrow but tiny: tm*4 bytes).
                pl.BlockSpec((tm, 1), lambda i: (i, 0)),
                # Full embedding table, same block every step (stays resident).
                pl.BlockSpec((obj_size, embd_dim), lambda i: (0, 0)),
            ],
            # embd_dim == 128 here, so the output is already lane-dense.
            # TODO(synk): pack 128//embd_dim rows per lane-row if embd_dim < 128.
            out_specs=pl.BlockSpec((tm, embd_dim), lambda i: (i, 0)),
        ),
        compiler_params=pltpu.CompilerParams(
            dimension_semantics=("parallel",),   # independent tiles -> 2 TCs on v7x
            vmem_limit_bytes=vmem_limit,
        ),
    )(ids2d, table)

    if n_pad != n:
        out = out[:n]
    return out.reshape(*orig_shape, embd_dim)


class EmbeddingLayer:
    """JAX/Pallas equivalent of the PyTorch EmbeddingLayer module (forward only)."""

    def __init__(self, obj_size, embd_dim, key):
        # nn.Embedding default init: weight ~ N(0, 1)
        self.obj_embd = jax.random.normal(key, (obj_size, embd_dim), jnp.float32)

    def __call__(self, obj_id):
        # TODO(synk): no custom VJP (scatter-add of grads into the table); forward only.
        return embedding_lookup(obj_id, self.obj_embd)


if __name__ == "__main__":
    key = jax.random.PRNGKey(0)
    k_tbl, k_idx = jax.random.split(key)

    obj_size, embd_dim = 64, 128
    batch, seq = 2, 8

    layer = EmbeddingLayer(obj_size, embd_dim, k_tbl)
    obj_id = jax.random.randint(k_idx, (batch, seq), 0, obj_size, dtype=jnp.int32)

    out = jax.block_until_ready(layer(obj_id))

    # Reference check against plain JAX gather (== torch embedding lookup).
    ref = layer.obj_embd[obj_id]
    assert out.shape == (batch, seq, embd_dim)
    assert jnp.allclose(out, ref, atol=1e-4, rtol=1e-4), "mismatch vs reference gather"

    print("KERNEL_OK")
</pallas_src>

<mosaic_0001>
module attributes {stable_mosaic.version = 11 : i64} {
  func.func @_embedding_onehot_kernel(%arg0: i32, %arg1: memref<16x1xi32, #tpu.memory_space<vmem>>, %arg2: memref<64x128xf32, #tpu.memory_space<vmem>>, %arg3: memref<16x128xf32, #tpu.memory_space<vmem>>) attributes {dimension_semantics = [#tpu.dimension_semantics<parallel>], iteration_bounds = array<i64: 1>, scalar_prefetch = 0 : i64, scratch_operands = 0 : i64, tpu.core_type = #tpu.core_type<tc>, window_params = [{transform_indices = @transform_0, window_bounds = array<i64: 16, 1>}, {pipeline_mode = #tpu.pipeline_mode<synchronous>, transform_indices = @transform_1, window_bounds = array<i64: 64, 128>}, {transform_indices = @transform_2, window_bounds = array<i64: 16, 128>}]} {
    %c0 = arith.constant 0 : index
    %c0_0 = arith.constant 0 : index
    %0 = vector.load %arg1[%c0, %c0_0] : memref<16x1xi32, #tpu.memory_space<vmem>>, vector<16x1xi32>
    %c0_i32 = arith.constant 0 : i32
    %c63_i32 = arith.constant 63 : i32
    %1 = vector.broadcast %c0_i32 : i32 to vector<16x1xi32>
    %2 = arith.maxsi %1, %0 : vector<16x1xi32>
    %3 = vector.broadcast %c63_i32 : i32 to vector<16x1xi32>
    %4 = arith.minsi %3, %2 : vector<16x1xi32>
    %5 = tpu.iota {dimensions = array<i32: 1>} : vector<16x64xi32>
    %6 = vector.broadcast %4 : vector<16x1xi32> to vector<16x64xi32>
    %7 = arith.cmpi eq, %5, %6 : vector<16x64xi32>
    %8 = arith.extui %7 : vector<16x64xi1> to vector<16x64xi32>
    %9 = arith.sitofp %8 : vector<16x64xi32> to vector<16x64xf32>
    %c0_1 = arith.constant 0 : index
    %c0_2 = arith.constant 0 : index
    %10 = vector.load %arg2[%c0_1, %c0_2] : memref<64x128xf32, #tpu.memory_space<vmem>>, vector<64x128xf32>
    %cst = arith.constant dense<0.000000e+00> : vector<16x128xf32>
    %11 = tpu.matmul %9, %10, %cst {dimension_numbers = #tpu.dot_dimension_numbers<[1], [0], [0], [1], [0, 0, 1, 1], [], []>, precision = #tpu.contract_precision<fp32>} : vector<16x64xf32>, vector<64x128xf32>, vector<16x128xf32> -> vector<16x128xf32>
    %c0_3 = arith.constant 0 : index
    %c0_4 = arith.constant 0 : index
    %12 = vector.load %arg3[%c0_3, %c0_4] : memref<16x128xf32, #tpu.memory_space<vmem>>, vector<16x128xf32>
    tpu.vector_store %arg3[%c0_3, %c0_4], %11 {strides = array<i32>} : memref<16x128xf32, #tpu.memory_space<vmem>>, vector<16x128xf32>,
    return
  }
  func.func @transform_0(%arg0: i32) -> (i32, i32) {
    %c0_i32 = arith.constant 0 : i32
    %c0_i32_0 = arith.constant 0 : i32
    return %arg0, %c0_i32 : i32, i32
  }
  func.func @transform_1(%arg0: i32) -> (i32, i32) {
    %c0_i32 = arith.constant 0 : i32
    %c0_i32_0 = arith.constant 0 : i32
    %c0_i32_1 = arith.constant 0 : i32
    return %c0_i32, %c0_i32_0 : i32, i32
  }
  func.func @transform_2(%arg0: i32) -> (i32, i32) {
    %c0_i32 = arith.constant 0 : i32
    %c0_i32_0 = arith.constant 0 : i32
    return %arg0, %c0_i32 : i32, i32
  }
}

</mosaic_0001>

<bundles_post_ra>
// kernel: tpu_custom_call.1
= control target key start
LH: loop header
LB: loop body
LE: loop exit
PB: predicated region body
PF: predicated region fallthrough
CT: control target
= control target key end

     0   :  { %7 = vsyncpa [#allocation3], 0  ;;  %s1108_s0 = inlined_call_operand.vmem [shape: s32[16,1], index: 0, kind: input, shape index: {}]   ;;  %s1109_s1 = inlined_call_operand.hbm [shape: f32[64,128], index: 1, kind: input, shape index: {}]   ;;  %s1110_s2 = inlined_call_operand.hbm [shape: f32[16,128], index: 2, kind: output, shape index: {}]  }
   0x1   :  { %8 = vsyncpa [#allocation4], 0  ;;  %s1007_s9 = smov [#allocation2]   ;;  %s959_s13 = scalar_lea.hbm %s1109_s1, 1024 }
   0x2   :  { %s16_s10 = sshll.u32 %s1007_s9, 4  ;;  %p960_p0 = scmp.ne.s32.totalorder %s1109_s1, %s959_s13  ;;  %s17_s10 = int_to_ptr.vmem [resolvable:$true] %s16_s10 }
   0x3   :  { %p963_p1 = scmp.lt.u32.totalorder %s959_s13, %s1109_s1 }
   0x5   :  { %p965_p2 = pnand %p963_p1, %p960_p0 }
   0x7   :  { %968 = shalt.err (!%p965_p2)
}
   0x8   :  { %s969_s18 = scalar_lea.vmem %s17_s10, 1024  ;;  %p974_p4 = scmp.lt.s32.totalorder %s17_s10, %s17_s10 }
   0x9   :  { %p970_p3 = scmp.ne.s32.totalorder %s17_s10, %s969_s18  ;;  %p975_p5 = scmp.lt.s32.totalorder %s969_s18, %s969_s18 }
   0xb   :  { %p976_p6 = por %p975_p5, %p974_p4 }
   0xd   :  { %p977_p7 = pnand %p976_p6, %p970_p3 }
   0xf   :  { %980 = shalt.err (!%p977_p7)
}
  0x10   :  { %s1008_s19 = smov 128   ;;  %s1009_s20 = smov 8  }
  0x11   :  { %22 = dma.hbm_to_vmem [thread:$0]  %s1109_s1, 1024, %s17_s10, [#allocation3], %s1008_s19, %s1008_s19, %s1009_s20  }
  0x12   :  { %1003 = dma.done.wait [#allocation3], 1024  }
  0x13   :  { %1004 = vsyncadd [#allocation3], 4294966272  ;;  %v1010_v0 = vmov 0   ;;  %v26_v1 = vld [vmem:[%s1108_s0] sm:$0xff]  ;;  %v27_v2 = vld [vmem:[%s1108_s0 + $0x8] sm:$0xff]  ;;  %vm58_vm4 = vcmask 523264  }
  0x14   :  { %958 = vset.pattern.permute.xlu0 %v1010_v0  ;;  %v50_v3 = vld [vmem:[#allocation2] sm:$0xff]  ;;  %vm28_vm0 = vcmp.gt.s32.totalorder %v26_v1, 0  ;;  %vm30_vm1 = vcmp.gt.s32.totalorder %v27_v2, 0  ;;  %v51_v4 = vld [vmem:[#allocation2 + $0x8] sm:$0xff]  ;;  %v52_v6 = vld [vmem:[#allocation2 + $0x10] sm:$0xff]  ;;  %s1012_s0 = smov [#allocation5]  }
  0x15   :  { %v66_v5 = vand.u32 4294901760, %v50_v3  ;;  %v53_v7 = vld [vmem:[#allocation2 + $0x18] sm:$0xff]  ;;  %v29_v8 = vsel %vm28_vm0, %v26_v1, 0  ;;  %v31_v9 = vsel %vm30_vm1, %v27_v2, 0  ;;  %v69_v10 = vand.u32 4294901760, %v51_v4  ;;  %v54_v12 = vld [vmem:[#allocation2 + $0x20] sm:$0xff] }
  0x16   :  { %v72_v11 = vand.u32 4294901760, %v52_v6  ;;  %v55_v13 = vld [vmem:[#allocation2 + $0x28] sm:$0xff]  ;;  %vm32_vm2 = vcmp.lt.s32.totalorder %v29_v8, 63  ;;  %vm34_vm3 = vcmp.lt.s32.totalorder %v31_v9, 63  ;;  %v75_v14 = vand.u32 4294901760, %v53_v7  ;;  %v56_v21 = vld [vmem:[#allocation2 + $0x30] sm:$0xff] }
  0x17   :  { %v33_v15 = vsel %vm32_vm2, %v29_v8, 63  ;;  %v1049_v16 = vpack.c.bf16 %v69_v10, %v66_v5  ;;  %v78_v17 = vand.u32 4294901760, %v54_v12  ;;  %v81_v18 = vand.u32 4294901760, %v55_v13  ;;  %v57_v22 = vld [vmem:[#allocation2 + $0x38] sm:$0xff]  ;;  %s652_s1 = sshll.u32 %s1012_s0, 4  ;;  %s653_s1 = int_to_ptr.vmem [resolvable:$true] %s652_s1 }
  0x18   :  { %39 = vperm.xlu0 %958, %v33_v15   ;;  %v1051_v19 = vpack.c.bf16 %v75_v14, %v72_v11  ;;  %v35_v20 = vsel %vm34_vm3, %v31_v9, 63  ;;  %v84_v24 = vand.u32 4294901760, %v56_v21  ;;  %v87_v25 = vand.u32 4294901760, %v57_v22  ;;  %s981_s27 = scalar_lea.vmem %s653_s1, 256  ;;  %p986_p9 = scmp.lt.s32.totalorder %s653_s1, %s653_s1 }
  0x19   :  { %895 = vmatprep.subr.bf16.mxu0 %v1049_v16  ;;  %847 = vmatprep.subr.bf16.mxu1 %v1049_v16  ;;  %v1059_v23 = vpack.c.bf16 %v81_v18, %v78_v17  ;;  %v160_v26 = vsub.f32 %v50_v3, %v66_v5  ;;  %v167_v27 = vsub.f32 %v51_v4, %v69_v10  ;;  %v1011_v10 = vmov 0.0   ;;  %p982_p8 = scmp.ne.s32.totalorder %s653_s1, %s981_s27  ;;  %p987_p10 = scmp.lt.s32.totalorder %s981_s27, %s981_s27 }
  0x1a   :  { %897 = vmatpush3.bf16.msra.mxu0 %v1049_v16  ;;  %849 = vmatpush3.bf16.msra.mxu1 %v1049_v16  ;;  %v1065_v30 = vpack.c.bf16 %v87_v25, %v84_v24  ;;  %v174_v33 = vsub.f32 %v52_v6, %v72_v11  ;;  %v181_v34 = vsub.f32 %v53_v7, %v75_v14  ;;  %v36_v7 = vlaneseq }
  0x1b   :  { %899 = vmatprep.subr.bf16.mxu0 %v1051_v19  ;;  %851 = vmatprep.subr.bf16.mxu1 %v1051_v19  ;;  %v161_v28 = vand.u32 4294901760, %v160_v26  ;;  %v168_v29 = vand.u32 4294901760, %v167_v27  ;;  %v188_v44 = vsub.f32 %v54_v12, %v78_v17  ;;  %v195_v45 = vsub.f32 %v55_v13, %v81_v18  ;;  %p988_p11 = por %p987_p10, %p986_p9 }
  0x1c   :  { %42 = vperm.xlu0 %958, %v35_v20   ;;  %v175_v38 = vand.u32 4294901760, %v174_v33  ;;  %v182_v39 = vand.u32 4294901760, %v181_v34  ;;  %v202_v51 = vsub.f32 %v56_v21, %v84_v24  ;;  %v209_v52 = vsub.f32 %v57_v22, %v87_v25 }
  0x1d   :  { %v162_v31 = vsub.f32 %v160_v26, %v161_v28  ;;  %v169_v32 = vsub.f32 %v167_v27, %v168_v29  ;;  %v1069_v35 = vpack.c.bf16 %v168_v29, %v161_v28  ;;  %v189_v48 = vand.u32 4294901760, %v188_v44  ;;  %p989_p12 = pnand %p988_p11, %p982_p8 }
  0x1e   :  { %901 = vmatpush3.bf16.msra.mxu0 %v1051_v19  ;;  %853 = vmatpush3.bf16.msra.mxu1 %v1051_v19  ;;  %v914_v41 = vpack.c.bf16 %v182_v39, %v175_v38  ;;  %v176_v42 = vsub.f32 %v174_v33, %v175_v38  ;;  %v183_v43 = vsub.f32 %v181_v34, %v182_v39  ;;  %v196_v49 = vand.u32 4294901760, %v195_v45 }
  0x1f   :  { %903 = vmatprep.subr.bf16.mxu0 %v1059_v23  ;;  %855 = vmatprep.subr.bf16.mxu1 %v1059_v23  ;;  %v163_v36 = vand.u32 4294901760, %v162_v31  ;;  %v170_v37 = vand.u32 4294901760, %v169_v32  ;;  %v190_v54 = vsub.f32 %v188_v44, %v189_v48  ;;  %v203_v56 = vand.u32 4294901760, %v202_v51 }
  0x20   :  { %v177_v46 = vand.u32 4294901760, %v176_v42  ;;  %v184_v47 = vand.u32 4294901760, %v183_v43  ;;  %v918_v53 = vpack.c.bf16 %v196_v49, %v189_v48  ;;  %v197_v55 = vsub.f32 %v195_v45, %v196_v49 }
  0x21   :  { %v862_v40 = vpack.c.bf16 %v170_v37, %v163_v36  ;;  %v210_v57 = vand.u32 4294901760, %v209_v52  ;;  %v191_v58 = vand.u32 4294901760, %v190_v54  ;;  %v204_v61 = vsub.f32 %v202_v51, %v203_v56 }
  0x22   :  { %905 = vmatpush3.bf16.msra.mxu0 %v1059_v23  ;;  %857 = vmatpush3.bf16.msra.mxu1 %v1059_v23  ;;  %v866_v50 = vpack.c.bf16 %v184_v47, %v177_v46  ;;  %v198_v59 = vand.u32 4294901760, %v197_v55  ;;  %v878_v3 = vpack.c.bf16 %v167_v27, %v160_v26  ;;  %v882_v4 = vpack.c.bf16 %v181_v34, %v174_v33 }
  0x23   :  { %907 = vmatprep.subr.bf16.mxu0 %v1065_v30  ;;  %859 = vmatprep.subr.bf16.mxu1 %v1065_v30  ;;  %v922_v60 = vpack.c.bf16 %v210_v57, %v203_v56  ;;  %v211_v62 = vsub.f32 %v209_v52, %v210_v57  ;;  %v205_v0 = vand.u32 4294901760, %v204_v61  ;;  %v886_v5 = vpack.c.bf16 %v195_v45, %v188_v44 }
  0x24   :  { %v870_v63 = vpack.c.bf16 %v198_v59, %v191_v58  ;;  %v890_v6 = vpack.c.bf16 %v209_v52, %v202_v51  ;;  %v37_v8 = vand.u32 127, %v36_v7 }
  0x25   :  { %v212_v1 = vand.u32 4294901760, %v211_v62 }
  0x26   :  { %909 = vmatpush3.bf16.msra.mxu0 %v1065_v30  ;;  %861 = vmatpush3.bf16.msra.mxu1 %v1065_v30 }
  0x27   :  { %911 = vmatprep.subr.bf16.mxu0 %v1069_v35  ;;  %863 = vmatprep.subr.bf16.mxu1 %v862_v40  ;;  %v874_v2 = vpack.c.bf16 %v212_v1, %v205_v0 }
  0x97   :  { %v40_v9 = vpop.permute.xlu0 %39 }
  0x98   :  { %vm44_vm5 = vcmp.eq.s32.totalorder %v37_v8, %v40_v9 }
  0x99   :  { %v664_v11 = vsel %vm44_vm5, 1.0, %v1011_v10 }
  0x9a   :  { %v60_v12 = vsel %vm58_vm4, %v664_v11, 0 }
  0x9b   :  { %v139_v13 = vsub.f32 %v60_v12, %v60_v12  ;;  %v43_v14 = vpop.permute.xlu0 %42 }
  0x9c   :  { %vm45_vm6 = vcmp.eq.s32.totalorder %v37_v8, %v43_v14 }
  0x9d   :  { %v665_v15 = vsel %vm45_vm6, 1.0, %v1011_v10  ;;  %v140_v17 = vand.u32 4294901760, %v139_v13 }
  0x9e   :  { %v63_v18 = vsel %vm58_vm4, %v665_v15, 0 }
  0x9f   :  { %v149_v20 = vsub.f32 %v63_v18, %v63_v18  ;;  %805 = vmatprep.mubr.f32.mxu0 %v140_v17  ;;  %v141_v21 = vsub.f32 %v139_v13, %v140_v17 }
  0xa1   :  { %v142_v22 = vand.u32 4294901760, %v141_v21  ;;  %v150_v24 = vand.u32 4294901760, %v149_v20 }
  0xa3   :  { %748 = vmatprep.mubr.f32.mxu1 %v142_v22  ;;  %806 = vmatmul.mubr.f32.vlgmr.msra.gmra.mrb[0].mxu0 %v150_v24  ;;  %v151_v25 = vsub.f32 %v149_v20, %v150_v24 }
  0xa4   :  { %913 = vmatpush3.bf16.msra.mxu0 %v1069_v35  ;;  %824 = vmatprep.mubr.msk.f32.mxu0 %vm58_vm4, %v664_v11 }
  0xa5   :  { %915 = vmatprep.subr.bf16.mxu0 %v914_v41  ;;  %v152_v26 = vand.u32 4294901760, %v151_v25 }
  0xa7   :  { %749 = vmatmul.mubr.f32.vlgmr.msra.gmra.mrb[0].mxu1 %v152_v26 }
  0xa8   :  { %865 = vmatpush3.bf16.msra.mxu1 %v862_v40  ;;  %917 = vmatpush3.bf16.msra.mxu0 %v914_v41 }
  0xa9   :  { %767 = vmatprep.mubr.msk.f32.mxu1 %vm58_vm4, %v664_v11  ;;  %867 = vmatprep.subr.bf16.mxu1 %v866_v50 }
  0xaa   :  { %919 = vmatprep.subr.bf16.mxu0 %v918_v53 }
  0xac   :  { %869 = vmatpush3.bf16.msra.mxu1 %v866_v50  ;;  %921 = vmatpush3.bf16.msra.mxu0 %v918_v53 }
  0xad   :  { %871 = vmatprep.subr.bf16.mxu1 %v870_v63  ;;  %923 = vmatprep.subr.bf16.mxu0 %v922_v60 }
  0xb0   :  { %873 = vmatpush3.bf16.msra.mxu1 %v870_v63  ;;  %925 = vmatpush3.bf16.msra.mxu0 %v922_v60 }
  0xb1   :  { %875 = vmatprep.subr.bf16.mxu1 %v874_v2  ;;  %927 = vmatprep.subr.bf16.mxu0 %v1049_v16 }
  0xb3   :  { %825 = vmatmul.mubr.msk.f32.vlgmr.msra.gmra.mrb[0].mxu0 %vm58_vm4, %v665_v15 }
  0xb4   :  { %877 = vmatpush3.bf16.msra.mxu1 %v874_v2  ;;  %929 = vmatpush3.bf16.msra.mxu0 %v1049_v16 }
  0xb5   :  { %843 = vmatprep.mubr.msk.f32.mxu0 %vm58_vm4, %v664_v11  ;;  %879 = vmatprep.subr.bf16.mxu1 %v878_v3 }
  0xb6   :  { %931 = vmatprep.subr.bf16.mxu0 %v1051_v19 }
  0xb7   :  { %768 = vmatmul.mubr.msk.f32.vlgmr.msra.gmra.mrb[0].mxu1 %vm58_vm4, %v665_v15 }
  0xb8   :  { %881 = vmatpush3.bf16.msra.mxu1 %v878_v3  ;;  %786 = vmatprep.mubr.f32.mxu1 %v139_v13 }
  0xb9   :  { %933 = vmatpush3.bf16.msra.mxu0 %v1051_v19  ;;  %883 = vmatprep.subr.bf16.mxu1 %v882_v4 }
  0xba   :  { %935 = vmatprep.subr.bf16.mxu0 %v1059_v23 }
  0xbc   :  { %885 = vmatpush3.bf16.msra.mxu1 %v882_v4 }
  0xbd   :  { %937 = vmatpush3.bf16.msra.mxu0 %v1059_v23  ;;  %887 = vmatprep.subr.bf16.mxu1 %v886_v5 }
  0xbe   :  { %939 = vmatprep.subr.bf16.mxu0 %v1065_v30 }
  0xc0   :  { %889 = vmatpush3.bf16.msra.mxu1 %v886_v5 }
  0xc1   :  { %941 = vmatpush3.bf16.msra.mxu0 %v1065_v30  ;;  %891 = vmatprep.subr.bf16.mxu1 %v890_v6 }
  0xc4   :  { %844 = vmatmul.mubr.msk.f32.vlgmr.msra.gmra.mrb[0].mxu0 %vm58_vm4, %v665_v15  ;;  %893 = vmatpush3.bf16.msra.mxu1 %v890_v6 }
  0xc7   :  { %787 = vmatmul.mubr.f32.vlgmr.msra.gmra.mrb[0].mxu1 %v149_v20 }
 0x197   :  { %v845_v16 = vpop.f32.mrb[0].mxu0 }
 0x198   :  { %v635_v27 = vpop.f32.mrb[1].mxu0 }
 0x19a   :  { %v788_v19 = vpop.f32.mrb[0].mxu1 }
 0x19b   :  { %v942_v28 = vadd.f32 %v845_v16, %v788_v19  ;;  %v359_v29 = vpop.f32.mrb[1].mxu1 }
 0x19c   :  { %v943_v31 = vadd.f32 %v635_v27, %v359_v29 }
 0x19d   :  { %646 = vst [vmem:[#allocation5 + $0x8] sm:$0xff] %v942_v28 }
 0x19e   :  { %645 = vst [vmem:[#allocation5] sm:$0xff] %v943_v31 }
 0x19f   :  { %992 = shalt.err (!%p989_p12)
}
 0x1a0   :  { %s993_s30 = scalar_lea.hbm %s1110_s2, 256 }
 0x1a1   :  { %p994_p13 = scmp.ne.s32.totalorder %s1110_s2, %s993_s30  ;;  %p997_p0 = scmp.lt.u32.totalorder %s993_s30, %s1110_s2 }
 0x1a3   :  { %p999_p1 = pnand %p997_p0, %p994_p13 }
 0x1a5   :  { %1002 = shalt.err (!%p999_p1)
}
 0x1a6   :  { %658 = dma.vmem_to_hbm [thread:$0]  %s653_s1, 256, %s1110_s2, [#allocation4], %s1008_s19, %s1008_s19, %s1009_s20  }
 0x1a7   :  { %1005 = dma.done.wait [#allocation4], 256  }
 0x1a8   :  { %1006 = vsyncadd [#allocation4], 4294967040 }
 0x1a9   :  { %662 = vsyncpa [#allocation3], 1 }
 0x1aa   :  { %663 = vsyncpa [#allocation4], 1 }

</bundles_post_ra>
